<compile_context>
chip_gen: v5e
topology: v5e:2x2
jax: 0.10.0
libtpu: 0.0.40
codegen_flags: <defaults>
</compile_context>

<pallas_src>
import jax
import jax.numpy as jnp
from jax.experimental import pallas as pl
from jax.experimental.pallas import tpu as pltpu

H = 15
W = 15
C_IN = 30
HW = H * W          # 225
BN_EPS = 1e-5


def _ceil_to(a, m):
    return ((a + m - 1) // m) * m


def policy_kernel(x_ref, wc_ref, be_ref, w1_ref, b1_ref, o_ref):
    """One batch tile of the forward pass, fully resident in VMEM.

    x_ref  : (TB, 30, 225) f32   VMEM  input tile (NCHW, H*W flattened on lanes)
    wc_ref : (30,)         f32   SMEM  conv1x1 weight * BN scale (folded)
    be_ref : (1,)          f32   SMEM  conv bias * BN scale + BN shift (folded)
    w1_ref : (225, 225)    bf16  VMEM  fc weight (transposed vs PyTorch)
    b1_ref : (1, 225)      f32   VMEM  fc bias
    o_ref  : (TB, 225)     f32   VMEM  output tile
    """
    # 1x1 conv == channel contraction.  Unrolled per-channel scalar-weighted
    # accumulation: 30 VPU mul-adds per output vreg, no XLU reduce and no
    # (TB, 30, 225) product temporary, so it stays hidden under the tile DMA.
    acc = x_ref[:, 0, :] * wc_ref[0]                       # (TB, 225) f32
    for c in range(1, C_IN):
        acc = acc + x_ref[:, c, :] * wc_ref[c]

    # Folded conv-bias + BN shift, then ReLU.
    h = jnp.maximum(acc + be_ref[0], 0.0)                  # (TB, 225) f32

    # fc: (TB,225) @ (225,225) on the MXU, bf16 operands, f32 accumulation.
    y = jnp.dot(h.astype(jnp.bfloat16), w1_ref[...],
                preferred_element_type=jnp.float32)
    o_ref[...] = y + b1_ref[...]                           # (TB, 225) f32


def _pick_tile(B, tb):
    """Batch tile: >=2 grid steps when B > 8 (megacore), multiple of 8."""
    if B <= 8:
        return B                      # block dim == full array dim is allowed
    return min(tb, _ceil_to(pl.cdiv(B, 2), 8))


def _vmem_budget_bytes(TB):
    """Honest VMEM footprint: double-buffered operands + small temporaries."""
    x_tile = TB * _ceil_to(C_IN, 8) * _ceil_to(HW, 128) * 4      # f32 x tile
    o_tile = TB * _ceil_to(HW, 128) * 4                          # f32 out tile
    w1_t = _ceil_to(HW, 8) * _ceil_to(HW, 128) * 2               # bf16 fc weight
    b1_t = 8 * _ceil_to(HW, 128) * 4                             # fc bias
    dbuf = 2 * (x_tile + o_tile + w1_t + b1_t)                   # double buffers
    temps = 4 * TB * _ceil_to(HW, 128) * 4                       # acc/h/y slack
    return dbuf + temps


def policy_model_forward(x_nchw, params, *, tb=512):
    """x_nchw: (B, 30, 15, 15) float32 -> (B, 225) float32."""
    B = x_nchw.shape[0]
    assert x_nchw.shape[1:] == (C_IN, H, W), x_nchw.shape
    TB = _pick_tile(B, tb)
    grid = (pl.cdiv(B, TB),)

    # Fold eval-mode BatchNorm into the 1x1 conv: z*scale + shift.
    scale = params["bn_gamma"] / jnp.sqrt(params["bn_var"] + BN_EPS)   # (1,)
    shift = params["bn_beta"] - params["bn_mean"] * scale              # (1,)
    wc_eff = (params["conv_w"].reshape(C_IN) * scale[0]).astype(jnp.float32)  # (30,)
    b_eff = (params["conv_b"] * scale + shift).astype(jnp.float32)            # (1,)

    w1 = params["fc_w"].T.astype(jnp.bfloat16)          # (225, 225)
    b1 = params["fc_b"].reshape(1, HW).astype(jnp.float32)

    # Keep x in f32: no standalone convert in front of the kernel (the reshape
    # is layout-preserving).  The kernel is DMA-bound on this operand.
    x_flat = x_nchw.reshape(B, C_IN, HW)

    flops = 2 * B * (C_IN * HW + HW * HW)
    # Logical HBM bytes; the (30,225)->(32,256) VMEM tile padding adds ~21%
    # to the real x DMA, but this is an advisory scheduling hint only.
    bytes_accessed = (B * C_IN * HW * 4          # x (f32)
                      + HW * HW * 2              # fc weight (bf16, resident)
                      + B * HW * 4               # output (f32)
                      + (HW + C_IN + 2) * 4)     # small params
    cost = pl.CostEstimate(flops=flops, transcendentals=0,
                           bytes_accessed=bytes_accessed)

    vmem_limit = min(60 * 1024 * 1024,
                     max(32 * 1024 * 1024, int(1.3 * _vmem_budget_bytes(TB))))

    return pl.pallas_call(
        policy_kernel,
        out_shape=jax.ShapeDtypeStruct((B, HW), jnp.float32),
        grid=grid,
        in_specs=[
            # Input tiles stream along the batch grid axis (auto double-buffered).
            pl.BlockSpec((TB, C_IN, HW), lambda i: (i, 0, 0)),
            # Folded conv/BN weight + bias: SMEM scalars.
            pl.BlockSpec(memory_space=pltpu.MemorySpace.SMEM),
            pl.BlockSpec(memory_space=pltpu.MemorySpace.SMEM),
            # fc weight/bias: constant index_map -> VMEM-resident across steps.
            pl.BlockSpec((HW, HW), lambda i: (0, 0)),
            pl.BlockSpec((1, HW), lambda i: (0, 0)),
        ],
        out_specs=pl.BlockSpec((TB, HW), lambda i: (i, 0)),
        compiler_params=pltpu.CompilerParams(
            dimension_semantics=("parallel",),     # megacore sharding on v7x
            vmem_limit_bytes=vmem_limit),
        cost_estimate=cost,
    )(x_flat, wc_eff, b_eff, w1, b1)


def init_params(key):
    ks = jax.random.split(key, 4)
    return {
        # Conv2d(30, 1, kernel_size=1)
        "conv_w": jax.random.normal(ks[0], (1, C_IN, 1, 1), jnp.float32) * 0.1,
        "conv_b": jax.random.normal(ks[1], (1,), jnp.float32) * 0.1,
        # BatchNorm2d(1) — eval-mode running stats + affine params
        "bn_gamma": jnp.ones((1,), jnp.float32) * 1.2,
        "bn_beta": jnp.ones((1,), jnp.float32) * 0.05,
        "bn_mean": jnp.ones((1,), jnp.float32) * 0.1,
        "bn_var": jnp.ones((1,), jnp.float32) * 1.5,
        # Linear(225, 225)
        "fc_w": jax.random.normal(ks[2], (HW, HW), jnp.float32) * 0.05,
        "fc_b": jax.random.normal(ks[3], (HW,), jnp.float32) * 0.05,
    }


def reference_forward(x, params):
    """Pure-JAX f32 reference matching the PyTorch forward (eval-mode BN)."""
    z = jnp.einsum("bchw,c->bhw", x, params["conv_w"].reshape(C_IN))
    z = z + params["conv_b"][0]
    z = (z - params["bn_mean"][0]) / jnp.sqrt(params["bn_var"][0] + BN_EPS)
    z = z * params["bn_gamma"][0] + params["bn_beta"][0]
    h = jnp.maximum(z, 0.0).reshape(-1, HW)
    return h @ params["fc_w"].T + params["fc_b"]


if __name__ == "__main__":
    key = jax.random.PRNGKey(0)
    pkey, xkey = jax.random.split(key)
    params = init_params(pkey)

    B = 2
    x = jax.random.normal(xkey, (B, C_IN, H, W), jnp.float32)  # NCHW

    out = jax.block_until_ready(policy_model_forward(x, params))
    ref = reference_forward(x, params)

    assert out.shape == (B, HW), out.shape
    # Only the fc runs in bf16 (single rounding of h and fc_w); compare with a
    # bf16-appropriate tolerance against the f32 reference.
    max_err = float(jnp.max(jnp.abs(out - ref)))
    assert jnp.allclose(out, ref, atol=2e-2, rtol=2e-2), max_err

    print("KERNEL_OK")
</pallas_src>

<mosaic_0001>
module attributes {stable_mosaic.version = 11 : i64} {
  func.func @policy_kernel(%arg0: i32, %arg1: memref<2x30x225xf32, #tpu.memory_space<vmem>>, %arg2: memref<30xf32, #tpu.memory_space<smem>>, %arg3: memref<1xf32, #tpu.memory_space<smem>>, %arg4: memref<225x225xbf16, #tpu.memory_space<vmem>>, %arg5: memref<1x225xf32, #tpu.memory_space<vmem>>, %arg6: memref<2x225xf32, #tpu.memory_space<vmem>>) attributes {dimension_semantics = [#tpu.dimension_semantics<parallel>], iteration_bounds = array<i64: 1>, scalar_prefetch = 0 : i64, scratch_operands = 0 : i64, tpu.core_type = #tpu.core_type<tc>, window_params = [{transform_indices = @transform_0, window_bounds = array<i64: 2, 30, 225>}, {transform_indices = @transform_1, window_bounds = array<i64: 30>}, {transform_indices = @transform_2, window_bounds = array<i64: 1>}, {pipeline_mode = #tpu.pipeline_mode<synchronous>, transform_indices = @transform_3, window_bounds = array<i64: 225, 225>}, {pipeline_mode = #tpu.pipeline_mode<synchronous>, transform_indices = @transform_4, window_bounds = array<i64: 1, 225>}, {transform_indices = @transform_5, window_bounds = array<i64: 2, 225>}]} {
    %c0 = arith.constant 0 : index
    %c0_0 = arith.constant 0 : index
    %c0_1 = arith.constant 0 : index
    %0 = vector.load %arg1[%c0, %c0_0, %c0_1] : memref<2x30x225xf32, #tpu.memory_space<vmem>>, vector<2x1x225xf32>
    %1 = vector.shape_cast %0 : vector<2x1x225xf32> to vector<2x225xf32>
    %c0_2 = arith.constant 0 : index
    %2 = memref.load %arg2[%c0_2] : memref<30xf32, #tpu.memory_space<smem>>
    %3 = vector.broadcast %2 : f32 to vector<2x225xf32>
    %4 = arith.mulf %1, %3 : vector<2x225xf32>
    %c0_3 = arith.constant 0 : index
    %c1 = arith.constant 1 : index
    %c0_4 = arith.constant 0 : index
    %5 = vector.load %arg1[%c0_3, %c1, %c0_4] : memref<2x30x225xf32, #tpu.memory_space<vmem>>, vector<2x1x225xf32>
    %6 = vector.shape_cast %5 : vector<2x1x225xf32> to vector<2x225xf32>
    %c1_5 = arith.constant 1 : index
    %7 = memref.load %arg2[%c1_5] : memref<30xf32, #tpu.memory_space<smem>>
    %8 = vector.broadcast %7 : f32 to vector<2x225xf32>
    %9 = arith.mulf %6, %8 : vector<2x225xf32>
    %10 = arith.addf %4, %9 : vector<2x225xf32>
    %c0_6 = arith.constant 0 : index
    %c2 = arith.constant 2 : index
    %c0_7 = arith.constant 0 : index
    %11 = vector.load %arg1[%c0_6, %c2, %c0_7] : memref<2x30x225xf32, #tpu.memory_space<vmem>>, vector<2x1x225xf32>
    %12 = vector.shape_cast %11 : vector<2x1x225xf32> to vector<2x225xf32>
    %c2_8 = arith.constant 2 : index
    %13 = memref.load %arg2[%c2_8] : memref<30xf32, #tpu.memory_space<smem>>
    %14 = vector.broadcast %13 : f32 to vector<2x225xf32>
    %15 = arith.mulf %12, %14 : vector<2x225xf32>
    %16 = arith.addf %10, %15 : vector<2x225xf32>
    %c0_9 = arith.constant 0 : index
    %c3 = arith.constant 3 : index
    %c0_10 = arith.constant 0 : index
    %17 = vector.load %arg1[%c0_9, %c3, %c0_10] : memref<2x30x225xf32, #tpu.memory_space<vmem>>, vector<2x1x225xf32>
    %18 = vector.shape_cast %17 : vector<2x1x225xf32> to vector<2x225xf32>
    %c3_11 = arith.constant 3 : index
    %19 = memref.load %arg2[%c3_11] : memref<30xf32, #tpu.memory_space<smem>>
    %20 = vector.broadcast %19 : f32 to vector<2x225xf32>
    %21 = arith.mulf %18, %20 : vector<2x225xf32>
    %22 = arith.addf %16, %21 : vector<2x225xf32>
    %c0_12 = arith.constant 0 : index
    %c4 = arith.constant 4 : index
    %c0_13 = arith.constant 0 : index
    %23 = vector.load %arg1[%c0_12, %c4, %c0_13] : memref<2x30x225xf32, #tpu.memory_space<vmem>>, vector<2x1x225xf32>
    %24 = vector.shape_cast %23 : vector<2x1x225xf32> to vector<2x225xf32>
    %c4_14 = arith.constant 4 : index
    %25 = memref.load %arg2[%c4_14] : memref<30xf32, #tpu.memory_space<smem>>
    %26 = vector.broadcast %25 : f32 to vector<2x225xf32>
    %27 = arith.mulf %24, %26 : vector<2x225xf32>
    %28 = arith.addf %22, %27 : vector<2x225xf32>
    %c0_15 = arith.constant 0 : index
    %c5 = arith.constant 5 : index
    %c0_16 = arith.constant 0 : index
    %29 = vector.load %arg1[%c0_15, %c5, %c0_16] : memref<2x30x225xf32, #tpu.memory_space<vmem>>, vector<2x1x225xf32>
    %30 = vector.shape_cast %29 : vector<2x1x225xf32> to vector<2x225xf32>
    %c5_17 = arith.constant 5 : index
    %31 = memref.load %arg2[%c5_17] : memref<30xf32, #tpu.memory_space<smem>>
    %32 = vector.broadcast %31 : f32 to vector<2x225xf32>
    %33 = arith.mulf %30, %32 : vector<2x225xf32>
    %34 = arith.addf %28, %33 : vector<2x225xf32>
    %c0_18 = arith.constant 0 : index
    %c6 = arith.constant 6 : index
    %c0_19 = arith.constant 0 : index
    %35 = vector.load %arg1[%c0_18, %c6, %c0_19] : memref<2x30x225xf32, #tpu.memory_space<vmem>>, vector<2x1x225xf32>
    %36 = vector.shape_cast %35 : vector<2x1x225xf32> to vector<2x225xf32>
    %c6_20 = arith.constant 6 : index
    %37 = memref.load %arg2[%c6_20] : memref<30xf32, #tpu.memory_space<smem>>
    %38 = vector.broadcast %37 : f32 to vector<2x225xf32>
    %39 = arith.mulf %36, %38 : vector<2x225xf32>
    %40 = arith.addf %34, %39 : vector<2x225xf32>
    %c0_21 = arith.constant 0 : index
    %c7 = arith.constant 7 : index
    %c0_22 = arith.constant 0 : index
    %41 = vector.load %arg1[%c0_21, %c7, %c0_22] : memref<2x30x225xf32, #tpu.memory_space<vmem>>, vector<2x1x225xf32>
    %42 = vector.shape_cast %41 : vector<2x1x225xf32> to vector<2x225xf32>
    %c7_23 = arith.constant 7 : index
    %43 = memref.load %arg2[%c7_23] : memref<30xf32, #tpu.memory_space<smem>>
    %44 = vector.broadcast %43 : f32 to vector<2x225xf32>
    %45 = arith.mulf %42, %44 : vector<2x225xf32>
    %46 = arith.addf %40, %45 : vector<2x225xf32>
    %c0_24 = arith.constant 0 : index
    %c8 = arith.constant 8 : index
    %c0_25 = arith.constant 0 : index
    %47 = vector.load %arg1[%c0_24, %c8, %c0_25] : memref<2x30x225xf32, #tpu.memory_space<vmem>>, vector<2x1x225xf32>
    %48 = vector.shape_cast %47 : vector<2x1x225xf32> to vector<2x225xf32>
    %c8_26 = arith.constant 8 : index
    %49 = memref.load %arg2[%c8_26] : memref<30xf32, #tpu.memory_space<smem>>
    %50 = vector.broadcast %49 : f32 to vector<2x225xf32>
    %51 = arith.mulf %48, %50 : vector<2x225xf32>
    %52 = arith.addf %46, %51 : vector<2x225xf32>
    %c0_27 = arith.constant 0 : index
    %c9 = arith.constant 9 : index
    %c0_28 = arith.constant 0 : index
    %53 = vector.load %arg1[%c0_27, %c9, %c0_28] : memref<2x30x225xf32, #tpu.memory_space<vmem>>, vector<2x1x225xf32>
    %54 = vector.shape_cast %53 : vector<2x1x225xf32> to vector<2x225xf32>
    %c9_29 = arith.constant 9 : index
    %55 = memref.load %arg2[%c9_29] : memref<30xf32, #tpu.memory_space<smem>>
    %56 = vector.broadcast %55 : f32 to vector<2x225xf32>
    %57 = arith.mulf %54, %56 : vector<2x225xf32>
    %58 = arith.addf %52, %57 : vector<2x225xf32>
    %c0_30 = arith.constant 0 : index
    %c10 = arith.constant 10 : index
    %c0_31 = arith.constant 0 : index
    %59 = vector.load %arg1[%c0_30, %c10, %c0_31] : memref<2x30x225xf32, #tpu.memory_space<vmem>>, vector<2x1x225xf32>
    %60 = vector.shape_cast %59 : vector<2x1x225xf32> to vector<2x225xf32>
    %c10_32 = arith.constant 10 : index
    %61 = memref.load %arg2[%c10_32] : memref<30xf32, #tpu.memory_space<smem>>
    %62 = vector.broadcast %61 : f32 to vector<2x225xf32>
    %63 = arith.mulf %60, %62 : vector<2x225xf32>
    %64 = arith.addf %58, %63 : vector<2x225xf32>
    %c0_33 = arith.constant 0 : index
    %c11 = arith.constant 11 : index
    %c0_34 = arith.constant 0 : index
    %65 = vector.load %arg1[%c0_33, %c11, %c0_34] : memref<2x30x225xf32, #tpu.memory_space<vmem>>, vector<2x1x225xf32>
    %66 = vector.shape_cast %65 : vector<2x1x225xf32> to vector<2x225xf32>
    %c11_35 = arith.constant 11 : index
    %67 = memref.load %arg2[%c11_35] : memref<30xf32, #tpu.memory_space<smem>>
    %68 = vector.broadcast %67 : f32 to vector<2x225xf32>
    %69 = arith.mulf %66, %68 : vector<2x225xf32>
    %70 = arith.addf %64, %69 : vector<2x225xf32>
    %c0_36 = arith.constant 0 : index
    %c12 = arith.constant 12 : index
    %c0_37 = arith.constant 0 : index
    %71 = vector.load %arg1[%c0_36, %c12, %c0_37] : memref<2x30x225xf32, #tpu.memory_space<vmem>>, vector<2x1x225xf32>
    %72 = vector.shape_cast %71 : vector<2x1x225xf32> to vector<2x225xf32>
    %c12_38 = arith.constant 12 : index
    %73 = memref.load %arg2[%c12_38] : memref<30xf32, #tpu.memory_space<smem>>
    %74 = vector.broadcast %73 : f32 to vector<2x225xf32>
    %75 = arith.mulf %72, %74 : vector<2x225xf32>
    %76 = arith.addf %70, %75 : vector<2x225xf32>
    %c0_39 = arith.constant 0 : index
    %c13 = arith.constant 13 : index
    %c0_40 = arith.constant 0 : index
    %77 = vector.load %arg1[%c0_39, %c13, %c0_40] : memref<2x30x225xf32, #tpu.memory_space<vmem>>, vector<2x1x225xf32>
    %78 = vector.shape_cast %77 : vector<2x1x225xf32> to vector<2x225xf32>
    %c13_41 = arith.constant 13 : index
    %79 = memref.load %arg2[%c13_41] : memref<30xf32, #tpu.memory_space<smem>>
    %80 = vector.broadcast %79 : f32 to vector<2x225xf32>
    %81 = arith.mulf %78, %80 : vector<2x225xf32>
    %82 = arith.addf %76, %81 : vector<2x225xf32>
    %c0_42 = arith.constant 0 : index
    %c14 = arith.constant 14 : index
    %c0_43 = arith.constant 0 : index
    %83 = vector.load %arg1[%c0_42, %c14, %c0_43] : memref<2x30x225xf32, #tpu.memory_space<vmem>>, vector<2x1x225xf32>
    %84 = vector.shape_cast %83 : vector<2x1x225xf32> to vector<2x225xf32>
    %c14_44 = arith.constant 14 : index
    %85 = memref.load %arg2[%c14_44] : memref<30xf32, #tpu.memory_space<smem>>
    %86 = vector.broadcast %85 : f32 to vector<2x225xf32>
    %87 = arith.mulf %84, %86 : vector<2x225xf32>
    %88 = arith.addf %82, %87 : vector<2x225xf32>
    %c0_45 = arith.constant 0 : index
    %c15 = arith.constant 15 : index
    %c0_46 = arith.constant 0 : index
    %89 = vector.load %arg1[%c0_45, %c15, %c0_46] : memref<2x30x225xf32, #tpu.memory_space<vmem>>, vector<2x1x225xf32>
    %90 = vector.shape_cast %89 : vector<2x1x225xf32> to vector<2x225xf32>
    %c15_47 = arith.constant 15 : index
    %91 = memref.load %arg2[%c15_47] : memref<30xf32, #tpu.memory_space<smem>>
    %92 = vector.broadcast %91 : f32 to vector<2x225xf32>
    %93 = arith.mulf %90, %92 : vector<2x225xf32>
    %94 = arith.addf %88, %93 : vector<2x225xf32>
    %c0_48 = arith.constant 0 : index
    %c16 = arith.constant 16 : index
    %c0_49 = arith.constant 0 : index
    %95 = vector.load %arg1[%c0_48, %c16, %c0_49] : memref<2x30x225xf32, #tpu.memory_space<vmem>>, vector<2x1x225xf32>
    %96 = vector.shape_cast %95 : vector<2x1x225xf32> to vector<2x225xf32>
    %c16_50 = arith.constant 16 : index
    %97 = memref.load %arg2[%c16_50] : memref<30xf32, #tpu.memory_space<smem>>
    %98 = vector.broadcast %97 : f32 to vector<2x225xf32>
    %99 = arith.mulf %96, %98 : vector<2x225xf32>
    %100 = arith.addf %94, %99 : vector<2x225xf32>
    %c0_51 = arith.constant 0 : index
    %c17 = arith.constant 17 : index
    %c0_52 = arith.constant 0 : index
    %101 = vector.load %arg1[%c0_51, %c17, %c0_52] : memref<2x30x225xf32, #tpu.memory_space<vmem>>, vector<2x1x225xf32>
    %102 = vector.shape_cast %101 : vector<2x1x225xf32> to vector<2x225xf32>
    %c17_53 = arith.constant 17 : index
    %103 = memref.load %arg2[%c17_53] : memref<30xf32, #tpu.memory_space<smem>>
    %104 = vector.broadcast %103 : f32 to vector<2x225xf32>
    %105 = arith.mulf %102, %104 : vector<2x225xf32>
    %106 = arith.addf %100, %105 : vector<2x225xf32>
    %c0_54 = arith.constant 0 : index
    %c18 = arith.constant 18 : index
    %c0_55 = arith.constant 0 : index
    %107 = vector.load %arg1[%c0_54, %c18, %c0_55] : memref<2x30x225xf32, #tpu.memory_space<vmem>>, vector<2x1x225xf32>
    %108 = vector.shape_cast %107 : vector<2x1x225xf32> to vector<2x225xf32>
    %c18_56 = arith.constant 18 : index
    %109 = memref.load %arg2[%c18_56] : memref<30xf32, #tpu.memory_space<smem>>
    %110 = vector.broadcast %109 : f32 to vector<2x225xf32>
    %111 = arith.mulf %108, %110 : vector<2x225xf32>
    %112 = arith.addf %106, %111 : vector<2x225xf32>
    %c0_57 = arith.constant 0 : index
    %c19 = arith.constant 19 : index
    %c0_58 = arith.constant 0 : index
    %113 = vector.load %arg1[%c0_57, %c19, %c0_58] : memref<2x30x225xf32, #tpu.memory_space<vmem>>, vector<2x1x225xf32>
    %114 = vector.shape_cast %113 : vector<2x1x225xf32> to vector<2x225xf32>
    %c19_59 = arith.constant 19 : index
    %115 = memref.load %arg2[%c19_59] : memref<30xf32, #tpu.memory_space<smem>>
    %116 = vector.broadcast %115 : f32 to vector<2x225xf32>
    %117 = arith.mulf %114, %116 : vector<2x225xf32>
    %118 = arith.addf %112, %117 : vector<2x225xf32>
    %c0_60 = arith.constant 0 : index
    %c20 = arith.constant 20 : index
    %c0_61 = arith.constant 0 : index
    %119 = vector.load %arg1[%c0_60, %c20, %c0_61] : memref<2x30x225xf32, #tpu.memory_space<vmem>>, vector<2x1x225xf32>
    %120 = vector.shape_cast %119 : vector<2x1x225xf32> to vector<2x225xf32>
    %c20_62 = arith.constant 20 : index
    %121 = memref.load %arg2[%c20_62] : memref<30xf32, #tpu.memory_space<smem>>
    %122 = vector.broadcast %121 : f32 to vector<2x225xf32>
    %123 = arith.mulf %120, %122 : vector<2x225xf32>
    %124 = arith.addf %118, %123 : vector<2x225xf32>
    %c0_63 = arith.constant 0 : index
    %c21 = arith.constant 21 : index
    %c0_64 = arith.constant 0 : index
    %125 = vector.load %arg1[%c0_63, %c21, %c0_64] : memref<2x30x225xf32, #tpu.memory_space<vmem>>, vector<2x1x225xf32>
    %126 = vector.shape_cast %125 : vector<2x1x225xf32> to vector<2x225xf32>
    %c21_65 = arith.constant 21 : index
    %127 = memref.load %arg2[%c21_65] : memref<30xf32, #tpu.memory_space<smem>>
    %128 = vector.broadcast %127 : f32 to vector<2x225xf32>
    %129 = arith.mulf %126, %128 : vector<2x225xf32>
    %130 = arith.addf %124, %129 : vector<2x225xf32>
    %c0_66 = arith.constant 0 : index
    %c22 = arith.constant 22 : index
    %c0_67 = arith.constant 0 : index
    %131 = vector.load %arg1[%c0_66, %c22, %c0_67] : memref<2x30x225xf32, #tpu.memory_space<vmem>>, vector<2x1x225xf32>
    %132 = vector.shape_cast %131 : vector<2x1x225xf32> to vector<2x225xf32>
    %c22_68 = arith.constant 22 : index
    %133 = memref.load %arg2[%c22_68] : memref<30xf32, #tpu.memory_space<smem>>
    %134 = vector.broadcast %133 : f32 to vector<2x225xf32>
    %135 = arith.mulf %132, %134 : vector<2x225xf32>
    %136 = arith.addf %130, %135 : vector<2x225xf32>
    %c0_69 = arith.constant 0 : index
    %c23 = arith.constant 23 : index
    %c0_70 = arith.constant 0 : index
    %137 = vector.load %arg1[%c0_69, %c23, %c0_70] : memref<2x30x225xf32, #tpu.memory_space<vmem>>, vector<2x1x225xf32>
    %138 = vector.shape_cast %137 : vector<2x1x225xf32> to vector<2x225xf32>
    %c23_71 = arith.constant 23 : index
    %139 = memref.load %arg2[%c23_71] : memref<30xf32, #tpu.memory_space<smem>>
    %140 = vector.broadcast %139 : f32 to vector<2x225xf32>
    %141 = arith.mulf %138, %140 : vector<2x225xf32>
    %142 = arith.addf %136, %141 : vector<2x225xf32>
    %c0_72 = arith.constant 0 : index
    %c24 = arith.constant 24 : index
    %c0_73 = arith.constant 0 : index
    %143 = vector.load %arg1[%c0_72, %c24, %c0_73] : memref<2x30x225xf32, #tpu.memory_space<vmem>>, vector<2x1x225xf32>
    %144 = vector.shape_cast %143 : vector<2x1x225xf32> to vector<2x225xf32>
    %c24_74 = arith.constant 24 : index
    %145 = memref.load %arg2[%c24_74] : memref<30xf32, #tpu.memory_space<smem>>
    %146 = vector.broadcast %145 : f32 to vector<2x225xf32>
    %147 = arith.mulf %144, %146 : vector<2x225xf32>
    %148 = arith.addf %142, %147 : vector<2x225xf32>
    %c0_75 = arith.constant 0 : index
    %c25 = arith.constant 25 : index
    %c0_76 = arith.constant 0 : index
    %149 = vector.load %arg1[%c0_75, %c25, %c0_76] : memref<2x30x225xf32, #tpu.memory_space<vmem>>, vector<2x1x225xf32>
    %150 = vector.shape_cast %149 : vector<2x1x225xf32> to vector<2x225xf32>
    %c25_77 = arith.constant 25 : index
    %151 = memref.load %arg2[%c25_77] : memref<30xf32, #tpu.memory_space<smem>>
    %152 = vector.broadcast %151 : f32 to vector<2x225xf32>
    %153 = arith.mulf %150, %152 : vector<2x225xf32>
    %154 = arith.addf %148, %153 : vector<2x225xf32>
    %c0_78 = arith.constant 0 : index
    %c26 = arith.constant 26 : index
    %c0_79 = arith.constant 0 : index
    %155 = vector.load %arg1[%c0_78, %c26, %c0_79] : memref<2x30x225xf32, #tpu.memory_space<vmem>>, vector<2x1x225xf32>
    %156 = vector.shape_cast %155 : vector<2x1x225xf32> to vector<2x225xf32>
    %c26_80 = arith.constant 26 : index
    %157 = memref.load %arg2[%c26_80] : memref<30xf32, #tpu.memory_space<smem>>
    %158 = vector.broadcast %157 : f32 to vector<2x225xf32>
    %159 = arith.mulf %156, %158 : vector<2x225xf32>
    %160 = arith.addf %154, %159 : vector<2x225xf32>
    %c0_81 = arith.constant 0 : index
    %c27 = arith.constant 27 : index
    %c0_82 = arith.constant 0 : index
    %161 = vector.load %arg1[%c0_81, %c27, %c0_82] : memref<2x30x225xf32, #tpu.memory_space<vmem>>, vector<2x1x225xf32>
    %162 = vector.shape_cast %161 : vector<2x1x225xf32> to vector<2x225xf32>
    %c27_83 = arith.constant 27 : index
    %163 = memref.load %arg2[%c27_83] : memref<30xf32, #tpu.memory_space<smem>>
    %164 = vector.broadcast %163 : f32 to vector<2x225xf32>
    %165 = arith.mulf %162, %164 : vector<2x225xf32>
    %166 = arith.addf %160, %165 : vector<2x225xf32>
    %c0_84 = arith.constant 0 : index
    %c28 = arith.constant 28 : index
    %c0_85 = arith.constant 0 : index
    %167 = vector.load %arg1[%c0_84, %c28, %c0_85] : memref<2x30x225xf32, #tpu.memory_space<vmem>>, vector<2x1x225xf32>
    %168 = vector.shape_cast %167 : vector<2x1x225xf32> to vector<2x225xf32>
    %c28_86 = arith.constant 28 : index
    %169 = memref.load %arg2[%c28_86] : memref<30xf32, #tpu.memory_space<smem>>
    %170 = vector.broadcast %169 : f32 to vector<2x225xf32>
    %171 = arith.mulf %168, %170 : vector<2x225xf32>
    %172 = arith.addf %166, %171 : vector<2x225xf32>
    %c0_87 = arith.constant 0 : index
    %c29 = arith.constant 29 : index
    %c0_88 = arith.constant 0 : index
    %173 = vector.load %arg1[%c0_87, %c29, %c0_88] : memref<2x30x225xf32, #tpu.memory_space<vmem>>, vector<2x1x225xf32>
    %174 = vector.shape_cast %173 : vector<2x1x225xf32> to vector<2x225xf32>
    %c29_89 = arith.constant 29 : index
    %175 = memref.load %arg2[%c29_89] : memref<30xf32, #tpu.memory_space<smem>>
    %176 = vector.broadcast %175 : f32 to vector<2x225xf32>
    %177 = arith.mulf %174, %176 : vector<2x225xf32>
    %178 = arith.addf %172, %177 : vector<2x225xf32>
    %c0_90 = arith.constant 0 : index
    %179 = memref.load %arg3[%c0_90] : memref<1xf32, #tpu.memory_space<smem>>
    %180 = vector.broadcast %179 : f32 to vector<2x225xf32>
    %181 = arith.addf %178, %180 : vector<2x225xf32>
    %cst = arith.constant 0.000000e+00 : f32
    %182 = vector.broadcast %cst : f32 to vector<2x225xf32>
    %183 = arith.maximumf %181, %182 : vector<2x225xf32>
    %184 = arith.truncf %183 : vector<2x225xf32> to vector<2x225xbf16>
    %c0_91 = arith.constant 0 : index
    %c0_92 = arith.constant 0 : index
    %185 = vector.load %arg4[%c0_91, %c0_92] : memref<225x225xbf16, #tpu.memory_space<vmem>>, vector<225x225xbf16>
    %cst_93 = arith.constant dense<0.000000e+00> : vector<2x225xf32>
    %186 = tpu.matmul %184, %185, %cst_93 {dimension_numbers = #tpu.dot_dimension_numbers<[1], [0], [0], [1], [0, 0, 1, 1], [], []>} : vector<2x225xbf16>, vector<225x225xbf16>, vector<2x225xf32> -> vector<2x225xf32>
    %c0_94 = arith.constant 0 : index
    %c0_95 = arith.constant 0 : index
    %187 = vector.load %arg5[%c0_94, %c0_95] : memref<1x225xf32, #tpu.memory_space<vmem>>, vector<1x225xf32>
    %188 = vector.broadcast %187 : vector<1x225xf32> to vector<2x225xf32>
    %189 = arith.addf %186, %188 : vector<2x225xf32>
    %c0_96 = arith.constant 0 : index
    %c0_97 = arith.constant 0 : index
    %190 = vector.load %arg6[%c0_96, %c0_97] : memref<2x225xf32, #tpu.memory_space<vmem>>, vector<2x225xf32>
    tpu.vector_store %arg6[%c0_96, %c0_97], %189 {strides = array<i32>} : memref<2x225xf32, #tpu.memory_space<vmem>>, vector<2x225xf32>,
    return
  }
  func.func @transform_0(%arg0: i32) -> (i32, i32, i32) {
    %c0_i32 = arith.constant 0 : i32
    %c0_i32_0 = arith.constant 0 : i32
    %c0_i32_1 = arith.constant 0 : i32
    return %arg0, %c0_i32, %c0_i32_0 : i32, i32, i32
  }
  func.func @transform_1(%arg0: i32) -> i32 {
    %c0_i32 = arith.constant 0 : i32
    %c0_i32_0 = arith.constant 0 : i32
    return %c0_i32 : i32
  }
  func.func @transform_2(%arg0: i32) -> i32 {
    %c0_i32 = arith.constant 0 : i32
    %c0_i32_0 = arith.constant 0 : i32
    return %c0_i32 : i32
  }
  func.func @transform_3(%arg0: i32) -> (i32, i32) {
    %c0_i32 = arith.constant 0 : i32
    %c0_i32_0 = arith.constant 0 : i32
    %c0_i32_1 = arith.constant 0 : i32
    return %c0_i32, %c0_i32_0 : i32, i32
  }
  func.func @transform_4(%arg0: i32) -> (i32, i32) {
    %c0_i32 = arith.constant 0 : i32
    %c0_i32_0 = arith.constant 0 : i32
    %c0_i32_1 = arith.constant 0 : i32
    return %c0_i32, %c0_i32_0 : i32, i32
  }
  func.func @transform_5(%arg0: i32) -> (i32, i32) {
    %c0_i32 = arith.constant 0 : i32
    %c0_i32_0 = arith.constant 0 : i32
    return %arg0, %c0_i32 : i32, i32
  }
}

</mosaic_0001>

<bundles_post_ra>
// kernel: tpu_custom_call.1
= control target key start
LH: loop header
LB: loop body
LE: loop exit
PB: predicated region body
PF: predicated region fallthrough
CT: control target
= control target key end

     0   :  { %11 = vsyncpa [#allocation5], 0  ;;  %s1399_s0 = inlined_call_operand.vmem [shape: f32[2,30,225], index: 0, kind: input, shape index: {}]   ;;  %s1400_s1 = inlined_call_operand.vmem [shape: f32[30], index: 1, kind: input, shape index: {}]   ;;  %s1401_s2 = inlined_call_operand.<no memory space> [shape: f32[1], index: 2, kind: input, shape index: {}]   ;;  %s1402_s3 = inlined_call_operand.vmem [shape: bf16[225,225], index: 3, kind: input, shape index: {}]   ;;  %s1403_s4 = inlined_call_operand.vmem [shape: f32[1,225], index: 4, kind: input, shape index: {}]   ;;  %s1404_s5 = inlined_call_operand.hbm [shape: f32[2,225], index: 5, kind: output, shape index: {}]  }
   0x1   :  { %12 = vsyncpa [#allocation4], 0  ;;  %s20_s20 = sshll.u32 %s1400_s1, 4  ;;  %s913_s21 = smov [#allocation3]   ;;  %s21_s20 = int_to_ptr.vmem [resolvable:$true] %s20_s20 }
   0x2   :  { %23 = dma.vmem_to_smem %s21_s20, 16, %s913_s21, [#allocation5]  }
   0x3   :  { %909 = dma.done.wait [#allocation5], 16  }
   0x4   :  { %910 = vsyncadd [#allocation5], 4294967280 }
   0x5   :  { %34 = sfence }
   0x6   :  { %v786_v0 = vld [vmem:[%s1402_s3 + $0x70] sm:$0xf]  ;;  %v857_v1 = vld [vmem:[%s1402_s3 + $0x74] sm:$0xf0]  ;;  %v856_v2 = vld [vmem:[%s1402_s3 + $0x74] sm:$0xf] }
   0x7   :  { %v787_v3 = vor.u32 %v857_v1, %v786_v0  ;;  %v788_v4 = vld [vmem:[%s1402_s3 + $0x78] sm:$0xf0]  ;;  %v778_v5 = vld [vmem:[%s1402_s3 + $0x60] sm:$0xf]  ;;  %v855_v6 = vld [vmem:[%s1402_s3 + $0x64] sm:$0xf0] }
   0x8   :  { %v791_v7 = vor.u32 %v856_v2, %v788_v4  ;;  %v381_v8 = vld [vmem:[%s1402_s3 + $0xe0] sm:$0x11]  ;;  %vm553_vm0 = vcmask 1040384   ;;  %v779_v10 = vor.u32 %v855_v6, %v778_v5  ;;  %v780_v12 = vld [vmem:[%s1402_s3 + $0x68] sm:$0xf0]  ;;  %v914_v14 = vmov 0  }
   0x9   :  { %v854_v9 = vld [vmem:[%s1402_s3 + $0x64] sm:$0xf]  ;;  %562 = vmatpush.bf16.msra.mxu0 %v787_v3  ;;  %v489_v11 = vunpack.c.l.b16 %v381_v8  ;;  %v490_v13 = vunpack.c.h.b16 %v381_v8  ;;  %v555_v15 = vsel %vm553_vm0, 65535, %v914_v14  ;;  %v770_v17 = vld [vmem:[%s1402_s3 + $0x50] sm:$0xf]  ;;  %s1078_s29 = sld [smem:[#allocation3]] }
   0xa   :  { %588 = vmatpush.bf16.msra.mxu2 %v791_v7  ;;  %v783_v16 = vor.u32 %v854_v9, %v780_v12  ;;  %v853_v18 = vld [vmem:[%s1402_s3 + $0x54] sm:$0xf0]  ;;  %v834_v21 = vld [vmem:[%s1402_s3 + $0xd0] sm:$0xf]  ;;  %v852_v22 = vld [vmem:[%s1402_s3 + $0x54] sm:$0xf] }
   0xb   :  { %v519_v19 = vpack.c.b16 %v489_v11, %v489_v11  ;;  %v520_v20 = vpack.c.b16 %v490_v13, %v490_v13  ;;  %v772_v23 = vld [vmem:[%s1402_s3 + $0x58] sm:$0xf0]  ;;  %v869_v24 = vld [vmem:[%s1402_s3 + $0xd4] sm:$0xf0]  ;;  %v868_v25 = vld [vmem:[%s1402_s3 + $0xd4] sm:$0xf]  ;;  %v771_v29 = vor.u32 %v853_v18, %v770_v17 }
   0xc   :  { %v836_v26 = vld [vmem:[%s1402_s3 + $0xd8] sm:$0xf0]  ;;  %v775_v30 = vor.u32 %v852_v22, %v772_v23  ;;  %v762_v31 = vld [vmem:[%s1402_s3 + $0x40] sm:$0xf]  ;;  %v851_v32 = vld [vmem:[%s1402_s3 + $0x44] sm:$0xf0]  ;;  %v835_v33 = vor.u32 %v869_v24, %v834_v21 }
   0xd   :  { %563 = vmatpush.bf16.msra.mxu0 %v779_v10  ;;  %v557_v27 = vand.u32 %v555_v15, %v519_v19  ;;  %v560_v28 = vand.u32 %v555_v15, %v520_v20  ;;  %v839_v34 = vor.u32 %v868_v25, %v836_v26  ;;  %v826_v35 = vld [vmem:[%s1402_s3 + $0xc0] sm:$0xf]  ;;  %v850_v36 = vld [vmem:[%s1402_s3 + $0x44] sm:$0xf]  ;;  %v764_v37 = vld [vmem:[%s1402_s3 + $0x48] sm:$0xf0]  ;;  %v763_v41 = vor.u32 %v851_v32, %v762_v31 }
   0xe   :  { %589 = vmatpush.bf16.msra.mxu2 %v783_v16  ;;  %v867_v38 = vld [vmem:[%s1402_s3 + $0xc4] sm:$0xf0]  ;;  %v866_v39 = vld [vmem:[%s1402_s3 + $0xc4] sm:$0xf]  ;;  %v828_v40 = vld [vmem:[%s1402_s3 + $0xc8] sm:$0xf0]  ;;  %v767_v42 = vor.u32 %v850_v36, %v764_v37 }
   0xf   :  { %576 = vmatpush.bf16.msra.mxu1 %v557_v27  ;;  %602 = vmatpush.bf16.msra.mxu3 %v560_v28  ;;  %v754_v43 = vld [vmem:[%s1402_s3 + $0x30] sm:$0xf]  ;;  %v849_v44 = vld [vmem:[%s1402_s3 + $0x34] sm:$0xf0]  ;;  %v827_v45 = vor.u32 %v867_v38, %v826_v35  ;;  %v831_v46 = vor.u32 %v866_v39, %v828_v40  ;;  %v848_v48 = vld [vmem:[%s1402_s3 + $0x34] sm:$0xf]  ;;  %v40_v27 = vstv %s1078_s29 }
  0x10   :  { %v818_v47 = vld [vmem:[%s1402_s3 + $0xb0] sm:$0xf]  ;;  %v756_v49 = vld [vmem:[%s1402_s3 + $0x38] sm:$0xf0]  ;;  %v865_v50 = vld [vmem:[%s1402_s3 + $0xb4] sm:$0xf0]  ;;  %v755_v53 = vor.u32 %v849_v44, %v754_v43 }
  0x11   :  { %564 = vmatpush.bf16.msra.mxu0 %v771_v29  ;;  %v864_v51 = vld [vmem:[%s1402_s3 + $0xb4] sm:$0xf]  ;;  %v820_v52 = vld [vmem:[%s1402_s3 + $0xb8] sm:$0xf0]  ;;  %v759_v54 = vor.u32 %v848_v48, %v756_v49  ;;  %v746_v55 = vld [vmem:[%s1402_s3 + $0x20] sm:$0xf]  ;;  %v819_v57 = vor.u32 %v865_v50, %v818_v47 }
  0x12   :  { %590 = vmatpush.bf16.msra.mxu2 %v775_v30  ;;  %v847_v56 = vld [vmem:[%s1402_s3 + $0x24] sm:$0xf0]  ;;  %v823_v58 = vor.u32 %v864_v51, %v820_v52  ;;  %v810_v59 = vld [vmem:[%s1402_s3 + $0xa0] sm:$0xf]  ;;  %v846_v60 = vld [vmem:[%s1402_s3 + $0x24] sm:$0xf] }
  0x13   :  { %577 = vmatpush.bf16.msra.mxu1 %v835_v33  ;;  %603 = vmatpush.bf16.msra.mxu3 %v839_v34  ;;  %v748_v61 = vld [vmem:[%s1402_s3 + $0x28] sm:$0xf0]  ;;  %v863_v62 = vld [vmem:[%s1402_s3 + $0xa4] sm:$0xf0]  ;;  %v862_v63 = vld [vmem:[%s1402_s3 + $0xa4] sm:$0xf]  ;;  %v747_v1 = vor.u32 %v847_v56, %v746_v55 }
  0x14   :  { %v812_v0 = vld [vmem:[%s1402_s3 + $0xa8] sm:$0xf0]  ;;  %v738_v2 = vld [vmem:[%s1402_s3 + $0x10] sm:$0xf]  ;;  %v845_v3 = vld [vmem:[%s1402_s3 + $0x14] sm:$0xf0]  ;;  %v751_v4 = vor.u32 %v846_v60, %v748_v61  ;;  %v811_v8 = vor.u32 %v863_v62, %v810_v59 }
  0x15   :  { %565 = vmatpush.bf16.msra.mxu0 %v763_v41  ;;  %v802_v5 = vld [vmem:[%s1402_s3 + $0x90] sm:$0xf]  ;;  %v861_v6 = vld [vmem:[%s1402_s3 + $0x94] sm:$0xf0]  ;;  %v844_v7 = vld [vmem:[%s1402_s3 + $0x14] sm:$0xf]  ;;  %v815_v9 = vor.u32 %v862_v63, %v812_v0  ;;  %v739_v15 = vor.u32 %v845_v3, %v738_v2 }
  0x16   :  { %591 = vmatpush.bf16.msra.mxu2 %v767_v42  ;;  %v740_v10 = vld [vmem:[%s1402_s3 + $0x18] sm:$0xf0]  ;;  %v860_v11 = vld [vmem:[%s1402_s3 + $0x94] sm:$0xf]  ;;  %v730_v13 = vld [vmem:[%s1402_s3] sm:$0xf]  ;;  %v803_v25 = vor.u32 %v861_v6, %v802_v5 }
  0x17   :  { %578 = vmatpush.bf16.msra.mxu1 %v827_v45  ;;  %604 = vmatpush.bf16.msra.mxu3 %v831_v46  ;;  %v804_v12 = vld [vmem:[%s1402_s3 + $0x98] sm:$0xf0]  ;;  %v843_v14 = vld [vmem:[%s1402_s3 + $0x4] sm:$0xf0]  ;;  %s1104_s21 = sld [smem:[#allocation3 + $0x1]]  ;;  %v743_v20 = vor.u32 %v844_v7, %v740_v10  ;;  %vm397_vm1 = vcmask 1041409  }
  0x18   :  { %v794_v16 = vld [vmem:[%s1402_s3 + $0x80] sm:$0xf]  ;;  %v859_v17 = vld [vmem:[%s1402_s3 + $0x84] sm:$0xf0]  ;;  %v842_v18 = vld [vmem:[%s1402_s3 + $0x4] sm:$0xf]  ;;  %v807_v26 = vor.u32 %v860_v11, %v804_v12  ;;  %v731_v30 = vor.u32 %v843_v14, %v730_v13 }
  0x19   :  { %566 = vmatpush.bf16.msra.mxu0 %v755_v53  ;;  %v732_v19 = vld [vmem:[%s1402_s3 + $0x8] sm:$0xf0]  ;;  %s1118_s30 = sld [smem:[#allocation3 + $0x2]]  ;;  %v858_v21 = vld [vmem:[%s1402_s3 + $0x84] sm:$0xf]  ;;  %v795_v35 = vor.u32 %v859_v17, %v794_v16  ;;  %vm549_vm2 = vcmask 793600  }
  0x1a   :  { %592 = vmatpush.bf16.msra.mxu2 %v759_v54  ;;  %v796_v22 = vld [vmem:[%s1402_s3 + $0x88] sm:$0xf0]  ;;  %v36_v23 = vld [vmem:[%s1399_s0] ss:$8 sm:$0x3]  ;;  %s1136_s16 = sld [smem:[#allocation3 + $0x3]]  ;;  %v735_v36 = vor.u32 %v842_v18, %v732_v19 }
  0x1b   :  { %579 = vmatpush.bf16.msra.mxu1 %v819_v57  ;;  %605 = vmatpush.bf16.msra.mxu3 %v823_v58  ;;  %v640_v24 = vld [vmem:[%s1399_s0 + $0x40] ss:$8 sm:$0x3]  ;;  %v641_v28 = vld [vmem:[%s1399_s0 + $0x1] ss:$8 sm:$0x3]  ;;  %v41_v31 = vmul.f32 %v40_v27, %v36_v23  ;;  %v799_v39 = vor.u32 %v858_v21, %v796_v22 }
  0x1c   :  { %v642_v29 = vld [vmem:[%s1399_s0 + $0x41] ss:$8 sm:$0x3]  ;;  %s1141_s18 = sld [smem:[#allocation3 + $0x4]]  ;;  %v42_v32 = vmul.f32 %v640_v24, %v40_v27  ;;  %vm617_vm3 = vcmask 1041408   ;;  %vm620_vm4 = vcmask 789506  }
  0x1d   :  { %567 = vmatpush.bf16.msra.mxu0 %v747_v1  ;;  %v644_v33 = vld [vmem:[%s1399_s0 + $0x2] ss:$8 sm:$0x3]  ;;  %v48_v37 = vstv %s1104_s21  ;;  %v647_v38 = vld [vmem:[%s1399_s0 + $0x3] ss:$8 sm:$0x3]  ;;  %vm621_vm5 = vmor %vm620_vm4, %vm617_vm3 }
  0x1e   :  { %593 = vmatpush.bf16.msra.mxu2 %v751_v4  ;;  %v645_v34 = vld [vmem:[%s1399_s0 + $0x42] ss:$8 sm:$0x3]  ;;  %s1153_s25 = sld [smem:[#allocation3 + $0x5]]  ;;  %v49_v40 = vmul.f32 %v641_v28, %v48_v37  ;;  %v50_v41 = vmul.f32 %v642_v29, %v48_v37 }
  0x1f   :  { %580 = vmatpush.bf16.msra.mxu1 %v811_v8  ;;  %606 = vmatpush.bf16.msra.mxu3 %v815_v9  ;;  %v58_v42 = vstv %s1118_s30  ;;  %v648_v43 = vld [vmem:[%s1399_s0 + $0x43] ss:$8 sm:$0x3]  ;;  %s1159_s1 = sld [smem:[#allocation3 + $0x6]] }
  0x20   :  { %v59_v44 = vmul.f32 %v644_v33, %v58_v42  ;;  %v60_v45 = vmul.f32 %v645_v34, %v58_v42  ;;  %v650_v46 = vld [vmem:[%s1399_s0 + $0x4] ss:$8 sm:$0x3]  ;;  %v51_v48 = vadd.f32 %v49_v40, %v41_v31  ;;  %v52_v49 = vadd.f32 %v50_v41, %v42_v32  ;;  %v653_v51 = vld [vmem:[%s1399_s0 + $0x5] ss:$8 sm:$0x3] }
  0x21   :  { %568 = vmatpush.bf16.msra.mxu0 %v739_v15  ;;  %v651_v47 = vld [vmem:[%s1399_s0 + $0x44] ss:$8 sm:$0x3]  ;;  %v68_v50 = vstv %s1136_s16  ;;  %s1171_s9 = sld [smem:[#allocation3 + $0x7]] }
  0x22   :  { %594 = vmatpush.bf16.msra.mxu2 %v743_v20  ;;  %v69_v52 = vmul.f32 %v647_v38, %v68_v50  ;;  %v70_v53 = vmul.f32 %v648_v43, %v68_v50  ;;  %v78_v54 = vstv %s1141_s18  ;;  %v654_v55 = vld [vmem:[%s1399_s0 + $0x45] ss:$8 sm:$0x3]  ;;  %s1177_s12 = sld [smem:[#allocation3 + $0x8]]  ;;  %v61_v56 = vadd.f32 %v59_v44, %v51_v48 }
  0x23   :  { %581 = vmatpush.bf16.msra.mxu1 %v803_v25  ;;  %607 = vmatpush.bf16.msra.mxu3 %v807_v26  ;;  %v62_v57 = vadd.f32 %v60_v45, %v52_v49  ;;  %v79_v58 = vmul.f32 %v650_v46, %v78_v54  ;;  %v656_v59 = vld [vmem:[%s1399_s0 + $0x6] ss:$8 sm:$0x3]  ;;  %v80_v60 = vmul.f32 %v651_v47, %v78_v54  ;;  %s1186_s3 = sld [smem:[#allocation3 + $0x9]] }
  0x24   :  { %v88_v61 = vstv %s1153_s25  ;;  %v657_v62 = vld [vmem:[%s1399_s0 + $0x46] ss:$8 sm:$0x3]  ;;  %v71_v63 = vadd.f32 %v69_v52, %v61_v56  ;;  %s1188_s17 = sld [smem:[#allocation3 + $0xa]] }
  0x25   :  { %569 = vmatpush.bf16.msra.mxu0 %v731_v30  ;;  %v72_v0 = vadd.f32 %v70_v53, %v62_v57  ;;  %v89_v1 = vmul.f32 %v653_v51, %v88_v61  ;;  %v90_v2 = vmul.f32 %v654_v55, %v88_v61  ;;  %v98_v3 = vstv %s1159_s1  ;;  %v659_v4 = vld [vmem:[%s1399_s0 + $0x7] ss:$8 sm:$0x3]  ;;  %v662_v10 = vld [vmem:[%s1399_s0 + $0x10] ss:$8 sm:$0x3] }
  0x26   :  { %595 = vmatpush.bf16.msra.mxu2 %v735_v36  ;;  %v660_v5 = vld [vmem:[%s1399_s0 + $0x47] ss:$8 sm:$0x3]  ;;  %v81_v6 = vadd.f32 %v79_v58, %v71_v63  ;;  %v99_v8 = vmul.f32 %v656_v59, %v98_v3  ;;  %v100_v9 = vmul.f32 %v657_v62, %v98_v3  ;;  %s1200_s24 = sld [smem:[#allocation3 + $0xb]] }
  0x27   :  { %582 = vmatpush.bf16.msra.mxu1 %v795_v35  ;;  %608 = vmatpush.bf16.msra.mxu3 %v799_v39  ;;  %v82_v7 = vadd.f32 %v80_v60, %v72_v0  ;;  %v108_v11 = vstv %s1171_s9  ;;  %v663_v12 = vld [vmem:[%s1399_s0 + $0x50] ss:$8 sm:$0x3]  ;;  %s1207_s27 = sld [smem:[#allocation3 + $0xc]] }
  0x28   :  { %v118_v13 = vstv %s1177_s12  ;;  %v91_v14 = vadd.f32 %v89_v1, %v81_v6  ;;  %v109_v16 = vmul.f32 %v659_v4, %v108_v11  ;;  %v110_v17 = vmul.f32 %v660_v5, %v108_v11  ;;  %v665_v18 = vld [vmem:[%s1399_s0 + $0x11] ss:$8 sm:$0x3]  ;;  %s1216_s7 = sld [smem:[#allocation3 + $0xd]] }
  0x29   :  { %v92_v15 = vadd.f32 %v90_v2, %v82_v7  ;;  %v666_v19 = vld [vmem:[%s1399_s0 + $0x51] ss:$8 sm:$0x3]  ;;  %v128_v20 = vstv %s1186_s3  ;;  %v119_v23 = vmul.f32 %v662_v10, %v118_v13  ;;  %v120_v24 = vmul.f32 %v663_v12, %v118_v13  ;;  %v668_v25 = vld [vmem:[%s1399_s0 + $0x12] ss:$8 sm:$0x3] }
  0x2a   :  { %v101_v21 = vadd.f32 %v99_v8, %v91_v14  ;;  %v669_v26 = vld [vmem:[%s1399_s0 + $0x52] ss:$8 sm:$0x3]  ;;  %v138_v27 = vstv %s1188_s17  ;;  %s1225_s11 = sld [smem:[#allocation3 + $0xe]]  ;;  %v129_v30 = vmul.f32 %v665_v18, %v128_v20  ;;  %v130_v31 = vmul.f32 %v666_v19, %v128_v20 }
  0x2b   :  { %v102_v22 = vadd.f32 %v100_v9, %v92_v15  ;;  %v671_v32 = vld [vmem:[%s1399_s0 + $0x13] ss:$8 sm:$0x3]  ;;  %s1234_s16 = sld [smem:[#allocation3 + $0xf]]  ;;  %v139_v37 = vmul.f32 %v668_v25, %v138_v27  ;;  %v140_v38 = vmul.f32 %v669_v26, %v138_v27 }
  0x2c   :  { %v111_v28 = vadd.f32 %v109_v16, %v101_v21  ;;  %v672_v33 = vld [vmem:[%s1399_s0 + $0x53] ss:$8 sm:$0x3]  ;;  %v148_v34 = vstv %s1200_s24  ;;  %v674_v39 = vld [vmem:[%s1399_s0 + $0x14] ss:$8 sm:$0x3] }
  0x2d   :  { %v112_v29 = vadd.f32 %v110_v17, %v102_v22  ;;  %v675_v40 = vld [vmem:[%s1399_s0 + $0x54] ss:$8 sm:$0x3]  ;;  %v158_v41 = vstv %s1207_s27  ;;  %s1243_s20 = sld [smem:[#allocation3 + $0x10]]  ;;  %v149_v44 = vmul.f32 %v671_v32, %v148_v34  ;;  %v150_v45 = vmul.f32 %v672_v33, %v148_v34  ;;  %s630_s27 = sshll.u32 %s1404_s5, 4  ;;  %s631_s27 = int_to_ptr.hbm [resolvable:$true] %s630_s27 }
  0x2e   :  { %v121_v35 = vadd.f32 %v119_v23, %v111_v28  ;;  %v677_v46 = vld [vmem:[%s1399_s0 + $0x15] ss:$8 sm:$0x3]  ;;  %v168_v48 = vstv %s1216_s7  ;;  %s1252_s25 = sld [smem:[#allocation3 + $0x11]]  ;;  %v159_v51 = vmul.f32 %v674_v39, %v158_v41  ;;  %v160_v52 = vmul.f32 %v675_v40, %v158_v41 }
  0x2f   :  { %v122_v36 = vadd.f32 %v120_v24, %v112_v29  ;;  %v678_v47 = vld [vmem:[%s1399_s0 + $0x55] ss:$8 sm:$0x3]  ;;  %v680_v53 = vld [vmem:[%s1399_s0 + $0x16] ss:$8 sm:$0x3]  ;;  %v169_v58 = vmul.f32 %v677_v46, %v168_v48 }
  0x30   :  { %v131_v42 = vadd.f32 %v129_v30, %v121_v35  ;;  %v681_v54 = vld [vmem:[%s1399_s0 + $0x56] ss:$8 sm:$0x3]  ;;  %v178_v55 = vstv %s1225_s11  ;;  %s1261_s28 = sld [smem:[#allocation3 + $0x12]]  ;;  %v170_v59 = vmul.f32 %v678_v47, %v168_v48 }
  0x31   :  { %v132_v43 = vadd.f32 %v130_v31, %v122_v36  ;;  %v683_v60 = vld [vmem:[%s1399_s0 + $0x17] ss:$8 sm:$0x3]  ;;  %v188_v62 = vstv %s1234_s16  ;;  %s1270_s9 = sld [smem:[#allocation3 + $0x13]]  ;;  %v179_v1 = vmul.f32 %v680_v53, %v178_v55  ;;  %v180_v2 = vmul.f32 %v681_v54, %v178_v55 }
  0x32   :  { %v141_v49 = vadd.f32 %v139_v37, %v131_v42  ;;  %v684_v61 = vld [vmem:[%s1399_s0 + $0x57] ss:$8 sm:$0x3]  ;;  %v686_v3 = vld [vmem:[%s1399_s0 + $0x20] ss:$8 sm:$0x3]  ;;  %v189_v8 = vmul.f32 %v683_v60, %v188_v62 }
  0x33   :  { %v142_v50 = vadd.f32 %v140_v38, %v132_v43  ;;  %v687_v4 = vld [vmem:[%s1399_s0 + $0x60] ss:$8 sm:$0x3]  ;;  %v198_v5 = vstv %s1243_s20  ;;  %s1279_s14 = sld [smem:[#allocation3 + $0x14]]  ;;  %v190_v9 = vmul.f32 %v684_v61, %v188_v62 }
  0x34   :  { %v151_v56 = vadd.f32 %v149_v44, %v141_v49  ;;  %v689_v10 = vld [vmem:[%s1399_s0 + $0x21] ss:$8 sm:$0x3]  ;;  %v208_v12 = vstv %s1252_s25  ;;  %s1288_s18 = sld [smem:[#allocation3 + $0x15]]  ;;  %v199_v15 = vmul.f32 %v686_v3, %v198_v5  ;;  %v200_v16 = vmul.f32 %v687_v4, %v198_v5 }
  0x35   :  { %v152_v57 = vadd.f32 %v150_v45, %v142_v50  ;;  %v690_v11 = vld [vmem:[%s1399_s0 + $0x61] ss:$8 sm:$0x3]  ;;  %v692_v17 = vld [vmem:[%s1399_s0 + $0x22] ss:$8 sm:$0x3]  ;;  %v209_v22 = vmul.f32 %v689_v10, %v208_v12 }
  0x36   :  { %v161_v63 = vadd.f32 %v159_v51, %v151_v56  ;;  %v693_v18 = vld [vmem:[%s1399_s0 + $0x62] ss:$8 sm:$0x3]  ;;  %v218_v19 = vstv %s1261_s28  ;;  %s1297_s23 = sld [smem:[#allocation3 + $0x16]]  ;;  %v210_v23 = vmul.f32 %v690_v11, %v208_v12 }
  0x37   :  { %v162_v0 = vadd.f32 %v160_v52, %v152_v57  ;;  %v695_v24 = vld [vmem:[%s1399_s0 + $0x23] ss:$8 sm:$0x3]  ;;  %v228_v26 = vstv %s1270_s9  ;;  %s1306_s1 = sld [smem:[#allocation3 + $0x17]]  ;;  %v219_v29 = vmul.f32 %v692_v17, %v218_v19  ;;  %v220_v30 = vmul.f32 %v693_v18, %v218_v19 }
  0x38   :  { %v171_v6 = vadd.f32 %v169_v58, %v161_v63  ;;  %v696_v25 = vld [vmem:[%s1399_s0 + $0x63] ss:$8 sm:$0x3]  ;;  %v698_v31 = vld [vmem:[%s1399_s0 + $0x24] ss:$8 sm:$0x3]  ;;  %v229_v36 = vmul.f32 %v695_v24, %v228_v26 }
  0x39   :  { %v172_v7 = vadd.f32 %v170_v59, %v162_v0  ;;  %v699_v32 = vld [vmem:[%s1399_s0 + $0x64] ss:$8 sm:$0x3]  ;;  %v238_v33 = vstv %s1279_s14  ;;  %s1315_s30 = sld [smem:[#allocation3 + $0x18]]  ;;  %v230_v37 = vmul.f32 %v696_v25, %v228_v26 }
  0x3a   :  { %v181_v13 = vadd.f32 %v179_v1, %v171_v6  ;;  %v701_v38 = vld [vmem:[%s1399_s0 + $0x25] ss:$8 sm:$0x3]  ;;  %v248_v40 = vstv %s1288_s18  ;;  %s1324_s12 = sld [smem:[#allocation3 + $0x19]]  ;;  %v239_v43 = vmul.f32 %v698_v31, %v238_v33  ;;  %v240_v44 = vmul.f32 %v699_v32, %v238_v33 }
  0x3b   :  { %v182_v14 = vadd.f32 %v180_v2, %v172_v7  ;;  %v702_v39 = vld [vmem:[%s1399_s0 + $0x65] ss:$8 sm:$0x3]  ;;  %v704_v45 = vld [vmem:[%s1399_s0 + $0x26] ss:$8 sm:$0x3]  ;;  %v249_v50 = vmul.f32 %v701_v38, %v248_v40 }
  0x3c   :  { %v191_v20 = vadd.f32 %v189_v8, %v181_v13  ;;  %v705_v46 = vld [vmem:[%s1399_s0 + $0x66] ss:$8 sm:$0x3]  ;;  %v258_v47 = vstv %s1297_s23  ;;  %s1333_s3 = sld [smem:[#allocation3 + $0x1a]]  ;;  %v250_v51 = vmul.f32 %v702_v39, %v248_v40  ;;  %s915_s23 = smov [#allocation6]  }
  0x3d   :  { %v192_v21 = vadd.f32 %v190_v9, %v182_v14  ;;  %v707_v52 = vld [vmem:[%s1399_s0 + $0x27] ss:$8 sm:$0x3]  ;;  %v268_v54 = vstv %s1306_s1  ;;  %s1342_s29 = sld [smem:[#allocation3 + $0x1b]]  ;;  %v259_v57 = vmul.f32 %v704_v45, %v258_v47  ;;  %v260_v58 = vmul.f32 %v705_v46, %v258_v47  ;;  %s628_s24 = sshll.u32 %s915_s23, 4  ;;  %s629_s24 = int_to_ptr.vmem [resolvable:$true] %s628_s24 }
  0x3e   :  { %v201_v27 = vadd.f32 %v199_v15, %v191_v20  ;;  %v708_v53 = vld [vmem:[%s1399_s0 + $0x67] ss:$8 sm:$0x3]  ;;  %v710_v59 = vld [vmem:[%s1399_s0 + $0x30] ss:$8 sm:$0x3]  ;;  %v269_v0 = vmul.f32 %v707_v52, %v268_v54 }
  0x3f   :  { %v202_v28 = vadd.f32 %v200_v16, %v192_v21  ;;  %v711_v60 = vld [vmem:[%s1399_s0 + $0x70] ss:$8 sm:$0x3]  ;;  %v278_v61 = vstv %s1315_s30  ;;  %s1351_s26 = sld [smem:[#allocation3 + $0x1c]]  ;;  %v270_v1 = vmul.f32 %v708_v53, %v268_v54 }
  0x40   :  { %v211_v34 = vadd.f32 %v209_v22, %v201_v27  ;;  %v713_v2 = vld [vmem:[%s1399_s0 + $0x31] ss:$8 sm:$0x3]  ;;  %v288_v4 = vstv %s1324_s12  ;;  %s1360_s6 = sld [smem:[#allocation3 + $0x1d]]  ;;  %v279_v7 = vmul.f32 %v710_v59, %v278_v61  ;;  %v280_v8 = vmul.f32 %v711_v60, %v278_v61 }
  0x41   :  { %v212_v35 = vadd.f32 %v210_v23, %v202_v28  ;;  %v714_v3 = vld [vmem:[%s1399_s0 + $0x71] ss:$8 sm:$0x3]  ;;  %v716_v9 = vld [vmem:[%s1399_s0 + $0x32] ss:$8 sm:$0x3]  ;;  %v289_v14 = vmul.f32 %v713_v2, %v288_v4 }
  0x42   :  { %v221_v41 = vadd.f32 %v219_v29, %v211_v34  ;;  %v717_v10 = vld [vmem:[%s1399_s0 + $0x72] ss:$8 sm:$0x3]  ;;  %v298_v11 = vstv %s1333_s3  ;;  %v290_v15 = vmul.f32 %v714_v3, %v288_v4  ;;  %v719_v16 = vld [vmem:[%s1399_s0 + $0x33] ss:$8 sm:$0x3] }
  0x43   :  { %v222_v42 = vadd.f32 %v220_v30, %v212_v35  ;;  %v720_v17 = vld [vmem:[%s1399_s0 + $0x73] ss:$8 sm:$0x3]  ;;  %v308_v18 = vstv %s1342_s29  ;;  %v299_v21 = vmul.f32 %v716_v9, %v298_v11  ;;  %v300_v22 = vmul.f32 %v717_v10, %v298_v11  ;;  %v722_v23 = vld [vmem:[%s1399_s0 + $0x34] ss:$8 sm:$0x3] }
  0x44   :  { %v231_v48 = vadd.f32 %v229_v36, %v221_v41  ;;  %v723_v24 = vld [vmem:[%s1399_s0 + $0x74] ss:$8 sm:$0x3]  ;;  %v309_v28 = vmul.f32 %v719_v16, %v308_v18  ;;  %v310_v29 = vmul.f32 %v720_v17, %v308_v18  ;;  %v725_v30 = vld [vmem:[%s1399_s0 + $0x35] ss:$8 sm:$0x3] }
  0x45   :  { %v232_v49 = vadd.f32 %v230_v37, %v222_v42  ;;  %v318_v25 = vstv %s1351_s26  ;;  %v726_v31 = vld [vmem:[%s1399_s0 + $0x75] ss:$8 sm:$0x3] }
  0x46   :  { %v241_v55 = vadd.f32 %v239_v43, %v231_v48  ;;  %v328_v32 = vstv %s1360_s6  ;;  %v319_v35 = vmul.f32 %v722_v23, %v318_v25  ;;  %v320_v36 = vmul.f32 %v723_v24, %v318_v25 }
  0x47   :  { %v242_v56 = vadd.f32 %v240_v44, %v232_v49  ;;  %v329_v39 = vmul.f32 %v725_v30, %v328_v32  ;;  %v330_v40 = vmul.f32 %v726_v31, %v328_v32  ;;  %v334_v43 = vstv %s1401_s2 }
  0x48   :  { %v251_v62 = vadd.f32 %v249_v50, %v241_v55 }
  0x49   :  { %v252_v63 = vadd.f32 %v250_v51, %v242_v56 }
  0x4a   :  { %v261_v5 = vadd.f32 %v259_v57, %v251_v62 }
  0x4b   :  { %v262_v6 = vadd.f32 %v260_v58, %v252_v63 }
  0x4c   :  { %v271_v12 = vadd.f32 %v269_v0, %v261_v5 }
  0x4d   :  { %v272_v13 = vadd.f32 %v270_v1, %v262_v6  ;;  %v382_v6 = vld [vmem:[%s1403_s4] sm:$0x3] }
  0x4e   :  { %v281_v19 = vadd.f32 %v279_v7, %v271_v12  ;;  %v384_v7 = vperm.slane %v382_v6, 0 }
  0x4f   :  { %v282_v20 = vadd.f32 %v280_v8, %v272_v13  ;;  %v385_v8 = vperm.slane %v382_v6, 1 }
  0x50   :  { %v291_v26 = vadd.f32 %v289_v14, %v281_v19 }
  0x51   :  { %v292_v27 = vadd.f32 %v290_v15, %v282_v20 }
  0x52   :  { %v301_v33 = vadd.f32 %v299_v21, %v291_v26 }
  0x53   :  { %v302_v34 = vadd.f32 %v300_v22, %v292_v27 }
  0x54   :  { %v311_v37 = vadd.f32 %v309_v28, %v301_v33 }
  0x55   :  { %v312_v38 = vadd.f32 %v310_v29, %v302_v34 }
  0x56   :  { %v321_v41 = vadd.f32 %v319_v35, %v311_v37 }
  0x57   :  { %v322_v42 = vadd.f32 %v320_v36, %v312_v38 }
  0x58   :  { %v331_v44 = vadd.f32 %v329_v39, %v321_v41 }
  0x59   :  { %v332_v45 = vadd.f32 %v330_v40, %v322_v42 }
  0x5a   :  { %v335_v46 = vadd.f32 %v334_v43, %v331_v44 }
  0x5b   :  { %v336_v47 = vadd.f32 %v334_v43, %v332_v45 }
  0x5c   :  { %v337_v48 = vmax.f32 %v335_v46, 0.0 }
  0x5d   :  { %v338_v49 = vmax.f32 %v336_v47, 0.0 }
  0x5e   :  { %v341_v50 = vperm.slane %v337_v48, 0  ;;  %v342_v52 = vperm.slane %v337_v48, 1 }
  0x5f   :  { %v343_v51 = vperm.slane %v338_v49, 0  ;;  %v344_v53 = vperm.slane %v338_v49, 1 }
  0x60   :  { %v349_v54 = vpack.c.bf16 %v341_v50, %v341_v50  ;;  %v350_v56 = vpack.c.bf16 %v342_v52, %v342_v52 }
  0x61   :  { %v351_v55 = vpack.c.bf16 %v343_v51, %v343_v51  ;;  %v352_v57 = vpack.c.bf16 %v344_v53, %v344_v53 }
  0x62   :  { %v392_v58 = vunpack.c.l.b16 %v349_v54  ;;  %v393_v60 = vunpack.c.l.b16 %v350_v56 }
  0x63   :  { %v394_v59 = vunpack.c.l.b16 %v351_v55  ;;  %v395_v61 = vunpack.c.l.b16 %v352_v57 }
  0x65   :  { %v396_v62 = vrot.slane %v394_v59, 7  ;;  %v399_v63 = vrot.slane %v395_v61, 7 }
  0x67   :  { %v398_v0 = vsel %vm397_vm1, %v396_v62, %v392_v58  ;;  %v400_v1 = vsel %vm397_vm1, %v399_v63, %v393_v60 }
  0x68   :  { %v401_v2 = vpack.c.b16 %v398_v0, %v398_v0  ;;  %v402_v3 = vpack.c.b16 %v400_v1, %v400_v1 }
  0x6a   :  { %570 = vmatmul.bf16.vlgmr.msra.gmra.mxu0 %v401_v2  ;;  %840 = vmatmul.msk.bf16.vlgmr.msra.gmra.mxu1 %vm549_vm2, %v402_v3 }
  0x6b   :  { %596 = vmatmul.bf16.vlgmr.msra.gmra.mxu2 %v401_v2  ;;  %841 = vmatmul.msk.bf16.vlgmr.msra.gmra.mxu3 %vm549_vm2, %v402_v3 }
  0xe7   :  { %v571_v4 = vpop.f32.mrf.mxu0  ;;  %v584_v5 = vpop.f32.mrf.mxu1 }
  0xe8   :  { %v572_v11 = vadd.f32 %v571_v4, %v384_v7 }
  0xea   :  { %v585_v16 = vadd.f32 %v584_v5, %v572_v11 }
  0xee   :  { %v597_v9 = vpop.f32.mrf.mxu2  ;;  %v610_v10 = vpop.f32.mrf.mxu3 }
  0xef   :  { %v598_v12 = vadd.f32 %v597_v9, %v385_v8  ;;  %v573_v13 = vpop.f32.mrf.mxu0  ;;  %v586_v14 = vpop.f32.mrf.mxu1 }
  0xf1   :  { %v611_v15 = vadd.f32 %v610_v10, %v598_v12 }
  0xf3   :  { %v616_v17 = vrot.slane %v611_v15, 6 }
  0xf5   :  { %v618_v18 = vsel %vm617_vm3, %v585_v16, %v616_v17 }
  0xf6   :  { %v599_v19 = vpop.f32.mrf.mxu2  ;;  %v612_v20 = vpop.f32.mrf.mxu3  ;;  %622 = vst.msk [vmem:[#allocation6] sm:$0xf] %vm621_vm5, %v618_v18 }
  0xf7   :  { %633 = dma.vmem_to_hbm [thread:$0]  %s629_s24, 64, %s631_s27, [#allocation4]  }
  0xf8   :  { %911 = dma.done.wait [#allocation4], 64  }
  0xf9   :  { %912 = vsyncadd [#allocation4], 4294967232 }
  0xfa   :  { %638 = vsyncpa [#allocation4], 1 }
  0xfb   :  { %639 = vsyncpa [#allocation5], 1 }

</bundles_post_ra>
